<compile_context>
chip_gen: v5e
topology: v5e:2x2
jax: 0.10.0
libtpu: 0.0.40
codegen_flags: <defaults>
</compile_context>

<pallas_src>
import functools
import math

import jax
import jax.numpy as jnp
from jax.experimental import pallas as pl
from jax.experimental.pallas import tpu as pltpu

_EPS = 1e-8                      # torch.nn.CosineSimilarity default eps
_EPS_SQ = _EPS * _EPS


def _round_up(v, m):
    return (v + m - 1) // m * m


def _vmem_caps():
    """Returns (scoped VMEM limit to request, byte budget for our tiles)."""
    cap = 64 * 1024 * 1024                      # conservative fallback (= v7x)
    try:
        cap = int(getattr(pltpu.get_tpu_info(), "vmem_capacity_bytes", cap))
    except Exception:
        pass
    limit = min(int(cap * 0.70), 112 * 1024 * 1024)  # ~45 MiB v7x, ~90 MiB v5e/v6e
    budget = int(limit * 0.85)                       # headroom for compiler scratch
    return limit, budget


# ---------------------------------------------------------------------------
# Pairwise (outer-product) path: out[i, j] = cos(x_i, y_j) / temp on the MXU
# ---------------------------------------------------------------------------
def _pairwise_kernel(x_ref, y_ref, o_ref, sx_ref, sy_ref, *, inv_temp, k_rem, tk):
    k = pl.program_id(2)
    nk = pl.num_programs(2)

    x = x_ref[...]
    y = y_ref[...]
    if k_rem:  # static: only compiled in when the K axis has a ragged tail
        nvalid = jnp.where(k == nk - 1, k_rem, tk)
        col = jax.lax.broadcasted_iota(jnp.int32, (1, tk), 1)
        keep = col < nvalid
        x = jnp.where(keep, x, jnp.zeros_like(x))
        y = jnp.where(keep, y, jnp.zeros_like(y))

    @pl.when(k == 0)
    def _init():
        o_ref[...] = jnp.zeros_like(o_ref)
        sx_ref[...] = jnp.zeros_like(sx_ref)
        sy_ref[...] = jnp.zeros_like(sy_ref)

    # Main dot: single-pass bf16 on the MXU, f32 accumulation into the
    # VMEM-resident output tile (o_ref's block index is k-invariant).
    xm = x.astype(jnp.bfloat16) if x.dtype == jnp.float32 else x
    ym = y.astype(jnp.bfloat16) if y.dtype == jnp.float32 else y
    o_ref[...] += jax.lax.dot_general(
        xm, ym,
        dimension_numbers=(((1,), (1,)), ((), ())),
        preferred_element_type=jnp.float32,
    )

    # Fused squared-norm accumulation: rides in VPU/MXU slack, removes the
    # separate XLA norm precompute (one whole extra HBM pass over X and Y).
    xf = x.astype(jnp.float32)
    yf = y.astype(jnp.float32)
    sx_ref[...] += jnp.sum(xf * xf, axis=-1, keepdims=True)          # (tm, 1)
    # y-norms land directly in lane-major (1, tn) layout via a tiny ones-matvec
    # on the MXU (avoids a sublane->lane relayout); HIGHEST keeps it ~f32-exact
    # at ~1/tm of the main matmul's cost.
    ones_row = jnp.ones((1, tk), jnp.float32)
    sy_ref[...] += jax.lax.dot_general(
        ones_row, yf * yf,
        dimension_numbers=(((1,), (1,)), ((), ())),
        preferred_element_type=jnp.float32,
        precision=jax.lax.Precision.HIGHEST,
    )

    @pl.when(k == nk - 1)
    def _finalize():
        # max(||x||*||y||, eps) == sqrt(max(sx*sy, eps^2)); rsqrt runs on the EUP.
        inv = jax.lax.rsqrt(jnp.maximum(sx_ref[...] * sy_ref[...], _EPS_SQ))
        o_ref[...] = o_ref[...] * inv * inv_temp


def _pairwise_similarity(x2, y2, inv_temp, tile_override=None):
    if x2.dtype != y2.dtype:
        ct = jnp.promote_types(x2.dtype, y2.dtype)
        x2 = x2.astype(ct)
        y2 = y2.astype(ct)
    Bx, H = x2.shape
    By, _ = y2.shape
    limit, budget = _vmem_caps()
    itemsize = x2.dtype.itemsize

    if tile_override is not None:
        tm, tn, tk = tile_override
    else:
        # Large output tiles cut cross-tile re-reads of X/Y; 512 is a multiple
        # of (8, 128) and of every generation's MXU dimension.
        tm = Bx if Bx <= 512 else 512
        tn = By if By <= 512 else 512
        # v7x has 2 TensorCores sharded over the parallel grid axes: make sure
        # there are at least 2 output tiles when there is enough work.
        if pl.cdiv(Bx, tm) * pl.cdiv(By, tn) < 2:
            if By >= 256:
                tn = _round_up(pl.cdiv(By, 2), 128)
            elif Bx >= 256:
                tm = _round_up(pl.cdiv(Bx, 2), 8)
        # K chunk sized so (2 inputs x 2 pipeline buffers) + resident output fit
        # the per-generation VMEM budget; no jnp.pad of the contraction axis.
        out_bytes = 2 * tm * tn * 4
        avail = max(budget - out_bytes, 1 << 22)
        tk_cap = max(128, (avail // (2 * (tm + tn) * itemsize)) // 128 * 128)
        tk = H if H <= tk_cap else tk_cap

    kgrid = pl.cdiv(H, tk)
    k_rem = H % tk if kgrid > 1 else 0
    grid = (pl.cdiv(Bx, tm), pl.cdiv(By, tn), kgrid)
    kernel = functools.partial(_pairwise_kernel, inv_temp=inv_temp,
                               k_rem=k_rem, tk=tk)

    return pl.pallas_call(
        kernel,
        out_shape=jax.ShapeDtypeStruct((Bx, By), jnp.float32),
        grid_spec=pltpu.PrefetchScalarGridSpec(
            num_scalar_prefetch=0,
            grid=grid,
            in_specs=[
                pl.BlockSpec((tm, tk), lambda i, j, k: (i, k)),   # x rows
                pl.BlockSpec((tn, tk), lambda i, j, k: (j, k)),   # y rows
            ],
            out_specs=pl.BlockSpec((tm, tn), lambda i, j, k: (i, j)),
            scratch_shapes=[
                pltpu.VMEM((tm, 1), jnp.float32),   # sum(x*x) per row-block
                pltpu.VMEM((1, tn), jnp.float32),   # sum(y*y) per col-block
            ],
        ),
        compiler_params=pltpu.CompilerParams(
            dimension_semantics=("parallel", "parallel", "arbitrary"),
            vmem_limit_bytes=limit,
        ),
    )(x2, y2)


def _maybe_pairwise(x, y, inv_temp, out_batch_shape):
    """Route any pure outer-product broadcast to the MXU pairwise kernel."""
    H = x.shape[-1]
    if y.shape[-1] != H:
        return None
    nb = max(x.ndim, y.ndim) - 1
    xsh = (1,) * (nb - (x.ndim - 1)) + tuple(x.shape[:-1])
    ysh = (1,) * (nb - (y.ndim - 1)) + tuple(y.shape[:-1])
    x_dims, y_dims = [], []
    for d in range(nb):
        if xsh[d] > 1 and ysh[d] > 1:
            return None                       # elementwise dim -> not an outer product
        if xsh[d] > 1:
            x_dims.append(d)
        elif ysh[d] > 1:
            y_dims.append(d)
    x2 = x.reshape((-1, H))                   # (Bx, H) -- no broadcast materialization
    y2 = y.reshape((-1, H))                   # (By, H)
    res = _pairwise_similarity(x2, y2, inv_temp)          # (Bx, By)
    res = res.reshape(tuple(xsh[d] for d in x_dims) + tuple(ysh[d] for d in y_dims))
    order = x_dims + y_dims
    perm = [order.index(d) for d in sorted(order)]
    if perm != list(range(len(perm))):
        res = jnp.transpose(res, perm)
    return res.reshape(out_batch_shape)


# ---------------------------------------------------------------------------
# General broadcast / elementwise path: per-row cosine similarity
# ---------------------------------------------------------------------------
def _rows_kernel(x_ref, y_ref, o_ref, sx_ref, sy_ref, *, inv_temp, k_rem, tk):
    k = pl.program_id(1)
    nk = pl.num_programs(1)

    x = x_ref[...].astype(jnp.float32)
    y = y_ref[...].astype(jnp.float32)
    if k_rem:  # static: mask the ragged K tail instead of an HBM jnp.pad copy
        nvalid = jnp.where(k == nk - 1, k_rem, tk)
        col = jax.lax.broadcasted_iota(jnp.int32, (1, tk), 1)
        keep = col < nvalid
        x = jnp.where(keep, x, jnp.zeros_like(x))
        y = jnp.where(keep, y, jnp.zeros_like(y))

    @pl.when(k == 0)
    def _init():
        o_ref[...] = jnp.zeros_like(o_ref)
        sx_ref[...] = jnp.zeros_like(sx_ref)
        sy_ref[...] = jnp.zeros_like(sy_ref)

    o_ref[...] += jnp.sum(x * y, axis=-1, keepdims=True)   # dot, accumulated in out
    sx_ref[...] += jnp.sum(x * x, axis=-1, keepdims=True)
    sy_ref[...] += jnp.sum(y * y, axis=-1, keepdims=True)

    @pl.when(k == nk - 1)
    def _finalize():
        inv = jax.lax.rsqrt(jnp.maximum(sx_ref[...] * sy_ref[...], _EPS_SQ))
        o_ref[...] = o_ref[...] * inv * inv_temp


def _elementwise_similarity(x, y, inv_temp, tile_override=None):
    # TODO(synk): mixed broadcast patterns (some dims elementwise, some broadcast)
    # still materialize the smaller operand here; pure outer-product broadcasts
    # are already routed to the MXU pairwise path in similarity().
    xb, yb = jnp.broadcast_arrays(x, y)
    batch_shape = xb.shape[:-1]
    H = xb.shape[-1]
    N = int(math.prod(batch_shape))
    x2 = xb.reshape(N, H)
    y2 = yb.reshape(N, H)
    if x2.dtype != y2.dtype:
        ct = jnp.promote_types(x2.dtype, y2.dtype)
        x2 = x2.astype(ct)
        y2 = y2.astype(ct)

    limit, budget = _vmem_caps()
    itemsize = x2.dtype.itemsize

    if tile_override is not None:
        tr, tk = tile_override
    else:
        # Full H per step unless even an 8-row tile would blow the VMEM budget.
        tk_cap = max(128, (budget // (4 * 8 * itemsize)) // 128 * 128)
        tk = H if H <= tk_cap else tk_cap
        per_row = 4 * tk * itemsize + 16        # 2 inputs x 2 buffers + out/scratch
        tr_max = max(8, (budget // per_row) // 8 * 8)
        if tr_max >= N:
            # Split big single-tile cases so both v7x TensorCores get work.
            tr = _round_up(pl.cdiv(N, 2), 8) if N >= 2048 else N
        else:
            tr = min(tr_max, 16384)             # keep several steps in the pipeline

    kgrid = pl.cdiv(H, tk)
    k_rem = H % tk if kgrid > 1 else 0
    grid = (pl.cdiv(N, tr), kgrid)
    kernel = functools.partial(_rows_kernel, inv_temp=inv_temp, k_rem=k_rem, tk=tk)

    # TODO(synk): output last dim is 1 (lane-sparse stores); <1% of HBM traffic
    # here, accepted in exchange for a layout-trivial, robust writeback.
    out = pl.pallas_call(
        kernel,
        out_shape=jax.ShapeDtypeStruct((N, 1), jnp.float32),
        grid_spec=pltpu.PrefetchScalarGridSpec(
            num_scalar_prefetch=0,
            grid=grid,
            in_specs=[
                pl.BlockSpec((tr, tk), lambda i, k: (i, k)),
                pl.BlockSpec((tr, tk), lambda i, k: (i, k)),
            ],
            out_specs=pl.BlockSpec((tr, 1), lambda i, k: (i, 0)),
            scratch_shapes=[
                pltpu.VMEM((tr, 1), jnp.float32),
                pltpu.VMEM((tr, 1), jnp.float32),
            ],
        ),
        compiler_params=pltpu.CompilerParams(
            dimension_semantics=("parallel", "arbitrary"),
            vmem_limit_bytes=limit,
        ),
    )(x2, y2)
    return out[:, 0].reshape(batch_shape)


# ---------------------------------------------------------------------------
# Public entry point (Similarity.forward equivalent)
# ---------------------------------------------------------------------------
def similarity(x, y, temp):
    """Cosine similarity along the last axis divided by temp."""
    x = jnp.asarray(x)
    y = jnp.asarray(y)
    inv_temp = 1.0 / float(temp)

    out_shape = jnp.broadcast_shapes(x.shape, y.shape)
    out_batch_shape = out_shape[:-1]
    if any(d == 0 for d in out_batch_shape) or out_shape[-1] == 0:
        return jnp.zeros(out_batch_shape, jnp.float32)

    # Outer-product fast path: covers (Bx,1,H) vs (1,By,H), (Bx,1,H) vs (By,H),
    # and any broadcast where x's and y's non-unit batch dims are disjoint.
    res = _maybe_pairwise(x, y, inv_temp, out_batch_shape)
    if res is not None:
        return res

    # General case: broadcast, flatten rows, reduce along the feature axis.
    return _elementwise_similarity(x, y, inv_temp)


def _reference(x, y, temp):
    xb, yb = jnp.broadcast_arrays(x, y)
    xf = xb.astype(jnp.float32)
    yf = yb.astype(jnp.float32)
    dot = jnp.sum(xf * yf, axis=-1)
    nx = jnp.linalg.norm(xf, axis=-1)
    ny = jnp.linalg.norm(yf, axis=-1)
    return dot / jnp.maximum(nx * ny, _EPS) / temp


if __name__ == "__main__":
    key = jax.random.PRNGKey(0)
    ks = jax.random.split(key, 10)
    temp = 0.05

    # 1) SimCSE-style pairwise use: x (B,1,H), y (1,B,H) -> (B,B) sim matrix.
    B, H = 8, 32
    x = jax.random.normal(ks[0], (B, 1, H), dtype=jnp.float32)
    y = jax.random.normal(ks[1], (1, B, H), dtype=jnp.float32)
    out = jax.block_until_ready(similarity(x, y, temp))
    ref = _reference(x, y, temp)
    assert out.shape == (B, B), out.shape
    # bf16 single-pass MXU numerics -> looser tolerance than a pure-f32 check.
    assert jnp.allclose(out, ref, atol=5e-2, rtol=5e-2), float(
        jnp.max(jnp.abs(out - ref)))

    # 2) Generalized outer-product broadcast with interleaved batch dims.
    xa = jax.random.normal(ks[2], (1, 5, 32), dtype=jnp.float32)
    ya = jax.random.normal(ks[3], (4, 1, 32), dtype=jnp.float32)
    out_a = jax.block_until_ready(similarity(xa, ya, temp))
    ref_a = _reference(xa, ya, temp)
    assert out_a.shape == (4, 5), out_a.shape
    assert jnp.allclose(out_a, ref_a, atol=5e-2, rtol=5e-2), float(
        jnp.max(jnp.abs(out_a - ref_a)))

    # 3) Mixed broadcast / elementwise use (ragged row count 5*7=35).
    xe = jax.random.normal(ks[4], (5, 7, 32), dtype=jnp.float32)
    ye = jax.random.normal(ks[5], (7, 32), dtype=jnp.float32)
    out_e = jax.block_until_ready(similarity(xe, ye, temp))
    ref_e = _reference(xe, ye, temp)
    assert out_e.shape == (5, 7), out_e.shape
    assert jnp.allclose(out_e, ref_e, atol=2e-3, rtol=2e-3), float(
        jnp.max(jnp.abs(out_e - ref_e)))

    # 4) Partial row blocks + ragged K tail on the pairwise path (forced tiles).
    xp = jax.random.normal(ks[6], (20, 160), dtype=jnp.float32)
    yp = jax.random.normal(ks[7], (36, 160), dtype=jnp.float32)
    out_p = jax.block_until_ready(
        _pairwise_similarity(xp, yp, 1.0 / temp, tile_override=(16, 36, 128)))
    ref_p = _reference(xp[:, None, :], yp[None, :, :], temp)
    assert out_p.shape == (20, 36), out_p.shape
    assert jnp.allclose(out_p, ref_p, atol=5e-2, rtol=5e-2), float(
        jnp.max(jnp.abs(out_p - ref_p)))

    # 5) Partial row blocks + ragged K tail on the elementwise path.
    xr = jax.random.normal(ks[8], (35, 160), dtype=jnp.float32)
    yr = jax.random.normal(ks[9], (35, 160), dtype=jnp.float32)
    out_r = jax.block_until_ready(
        _elementwise_similarity(xr, yr, 1.0 / temp, tile_override=(16, 128)))
    ref_r = _reference(xr, yr, temp)
    assert out_r.shape == (35,), out_r.shape
    assert jnp.allclose(out_r, ref_r, atol=2e-3, rtol=2e-3), float(
        jnp.max(jnp.abs(out_r - ref_r)))

    print("KERNEL_OK")
</pallas_src>

<mosaic_0001>
module attributes {stable_mosaic.version = 11 : i64} {
  func.func @_pairwise_kernel(%arg0: i32, %arg1: i32, %arg2: i32, %arg3: memref<8x32xf32, #tpu.memory_space<vmem>>, %arg4: memref<8x32xf32, #tpu.memory_space<vmem>>, %arg5: memref<8x8xf32, #tpu.memory_space<vmem>>, %arg6: memref<8x1xf32, #tpu.memory_space<vmem>>, %arg7: memref<1x8xf32, #tpu.memory_space<vmem>>) attributes {dimension_semantics = [#tpu.dimension_semantics<parallel>, #tpu.dimension_semantics<parallel>, #tpu.dimension_semantics<arbitrary>], iteration_bounds = array<i64: 1, 1, 1>, scalar_prefetch = 0 : i64, scratch_operands = 2 : i64, tpu.core_type = #tpu.core_type<tc>, window_params = [{transform_indices = @transform_0, window_bounds = array<i64: 8, 32>}, {transform_indices = @transform_1, window_bounds = array<i64: 8, 32>}, {transform_indices = @transform_2, window_bounds = array<i64: 8, 8>}]} {
    %c0 = arith.constant 0 : index
    %c0_0 = arith.constant 0 : index
    %0 = vector.load %arg3[%c0, %c0_0] : memref<8x32xf32, #tpu.memory_space<vmem>>, vector<8x32xf32>
    %c0_1 = arith.constant 0 : index
    %c0_2 = arith.constant 0 : index
    %1 = vector.load %arg4[%c0_1, %c0_2] : memref<8x32xf32, #tpu.memory_space<vmem>>, vector<8x32xf32>
    %c0_i32 = arith.constant 0 : i32
    %2 = arith.cmpi eq, %arg2, %c0_i32 : i32
    %3 = arith.extui %2 : i1 to i32
    %c0_i32_3 = arith.constant 0 : i32
    %4 = arith.cmpi ne, %3, %c0_i32_3 : i32
    scf.if %4 {
      %cst_21 = arith.constant 0.000000e+00 : f32
      %26 = vector.broadcast %cst_21 : f32 to vector<8x8xf32>
      %c0_22 = arith.constant 0 : index
      %c0_23 = arith.constant 0 : index
      %27 = vector.load %arg5[%c0_22, %c0_23] : memref<8x8xf32, #tpu.memory_space<vmem>>, vector<8x8xf32>
      tpu.vector_store %arg5[%c0_22, %c0_23], %26 {strides = array<i32>} : memref<8x8xf32, #tpu.memory_space<vmem>>, vector<8x8xf32>,
      %cst_24 = arith.constant 0.000000e+00 : f32
      %28 = vector.broadcast %cst_24 : f32 to vector<8x1xf32>
      %c0_25 = arith.constant 0 : index
      %c0_26 = arith.constant 0 : index
      %29 = vector.load %arg6[%c0_25, %c0_26] : memref<8x1xf32, #tpu.memory_space<vmem>>, vector<8x1xf32>
      tpu.vector_store %arg6[%c0_25, %c0_26], %28 {strides = array<i32>} : memref<8x1xf32, #tpu.memory_space<vmem>>, vector<8x1xf32>,
      %cst_27 = arith.constant 0.000000e+00 : f32
      %30 = vector.broadcast %cst_27 : f32 to vector<1x8xf32>
      %c0_28 = arith.constant 0 : index
      %c0_29 = arith.constant 0 : index
      %31 = vector.load %arg7[%c0_28, %c0_29] : memref<1x8xf32, #tpu.memory_space<vmem>>, vector<1x8xf32>
      tpu.vector_store %arg7[%c0_28, %c0_29], %30 {strides = array<i32>} : memref<1x8xf32, #tpu.memory_space<vmem>>, vector<1x8xf32>,
    } else {
    }
    %5 = arith.truncf %0 : vector<8x32xf32> to vector<8x32xbf16>
    %6 = arith.truncf %1 : vector<8x32xf32> to vector<8x32xbf16>
    %c0_4 = arith.constant 0 : index
    %c0_5 = arith.constant 0 : index
    %7 = vector.load %arg5[%c0_4, %c0_5] : memref<8x8xf32, #tpu.memory_space<vmem>>, vector<8x8xf32>
    %cst = arith.constant dense<0.000000e+00> : vector<8x8xf32>
    %8 = tpu.matmul %5, %6, %cst {dimension_numbers = #tpu.dot_dimension_numbers<[1], [1], [0], [0], [0, 0, 1, 0], [], []>} : vector<8x32xbf16>, vector<8x32xbf16>, vector<8x8xf32> -> vector<8x8xf32>
    %9 = arith.addf %7, %8 : vector<8x8xf32>
    %c0_6 = arith.constant 0 : index
    %c0_7 = arith.constant 0 : index
    %10 = vector.load %arg5[%c0_6, %c0_7] : memref<8x8xf32, #tpu.memory_space<vmem>>, vector<8x8xf32>
    tpu.vector_store %arg5[%c0_6, %c0_7], %9 {strides = array<i32>} : memref<8x8xf32, #tpu.memory_space<vmem>>, vector<8x8xf32>,
    %c0_8 = arith.constant 0 : index
    %c0_9 = arith.constant 0 : index
    %11 = vector.load %arg6[%c0_8, %c0_9] : memref<8x1xf32, #tpu.memory_space<vmem>>, vector<8x1xf32>
    %12 = arith.mulf %0, %0 : vector<8x32xf32>
    %cst_10 = arith.constant dense<0.000000e+00> : vector<8xf32>
    %13 = vector.multi_reduction <add>, %12, %cst_10 [1] : vector<8x32xf32> to vector<8xf32>
    %14 = vector.shape_cast %13 : vector<8xf32> to vector<8x1xf32>
    %15 = arith.addf %11, %14 : vector<8x1xf32>
    %c0_11 = arith.constant 0 : index
    %c0_12 = arith.constant 0 : index
    %16 = vector.load %arg6[%c0_11, %c0_12] : memref<8x1xf32, #tpu.memory_space<vmem>>, vector<8x1xf32>
    tpu.vector_store %arg6[%c0_11, %c0_12], %15 {strides = array<i32>} : memref<8x1xf32, #tpu.memory_space<vmem>>, vector<8x1xf32>,
    %cst_13 = arith.constant 1.000000e+00 : f32
    %17 = vector.broadcast %cst_13 : f32 to vector<1x32xf32>
    %c0_14 = arith.constant 0 : index
    %c0_15 = arith.constant 0 : index
    %18 = vector.load %arg7[%c0_14, %c0_15] : memref<1x8xf32, #tpu.memory_space<vmem>>, vector<1x8xf32>
    %19 = arith.mulf %1, %1 : vector<8x32xf32>
    %cst_16 = arith.constant dense<0.000000e+00> : vector<1x8xf32>
    %20 = tpu.matmul %17, %19, %cst_16 {dimension_numbers = #tpu.dot_dimension_numbers<[1], [1], [0], [0], [0, 0, 1, 0], [], []>, precision = #tpu.contract_precision<fp32>} : vector<1x32xf32>, vector<8x32xf32>, vector<1x8xf32> -> vector<1x8xf32>
    %21 = arith.addf %18, %20 : vector<1x8xf32>
    %c0_17 = arith.constant 0 : index
    %c0_18 = arith.constant 0 : index
    %22 = vector.load %arg7[%c0_17, %c0_18] : memref<1x8xf32, #tpu.memory_space<vmem>>, vector<1x8xf32>
    tpu.vector_store %arg7[%c0_17, %c0_18], %21 {strides = array<i32>} : memref<1x8xf32, #tpu.memory_space<vmem>>, vector<1x8xf32>,
    %c0_i32_19 = arith.constant 0 : i32
    %23 = arith.cmpi eq, %arg2, %c0_i32_19 : i32
    %24 = arith.extui %23 : i1 to i32
    %c0_i32_20 = arith.constant 0 : i32
    %25 = arith.cmpi ne, %24, %c0_i32_20 : i32
    scf.if %25 {
      %c0_21 = arith.constant 0 : index
      %c0_22 = arith.constant 0 : index
      %26 = vector.load %arg6[%c0_21, %c0_22] : memref<8x1xf32, #tpu.memory_space<vmem>>, vector<8x1xf32>
      %c0_23 = arith.constant 0 : index
      %c0_24 = arith.constant 0 : index
      %27 = vector.load %arg7[%c0_23, %c0_24] : memref<1x8xf32, #tpu.memory_space<vmem>>, vector<1x8xf32>
      %28 = vector.broadcast %26 : vector<8x1xf32> to vector<8x8xf32>
      %29 = vector.broadcast %27 : vector<1x8xf32> to vector<8x8xf32>
      %30 = arith.mulf %28, %29 : vector<8x8xf32>
      %cst_25 = arith.constant 1.000000e-16 : f32
      %31 = vector.broadcast %cst_25 : f32 to vector<8x8xf32>
      %32 = arith.maximumf %30, %31 : vector<8x8xf32>
      %33 = math.rsqrt %32 : vector<8x8xf32>
      %c0_26 = arith.constant 0 : index
      %c0_27 = arith.constant 0 : index
      %34 = vector.load %arg5[%c0_26, %c0_27] : memref<8x8xf32, #tpu.memory_space<vmem>>, vector<8x8xf32>
      %35 = arith.mulf %34, %33 : vector<8x8xf32>
      %cst_28 = arith.constant 2.000000e+01 : f32
      %36 = vector.broadcast %cst_28 : f32 to vector<8x8xf32>
      %37 = arith.mulf %35, %36 : vector<8x8xf32>
      %c0_29 = arith.constant 0 : index
      %c0_30 = arith.constant 0 : index
      %38 = vector.load %arg5[%c0_29, %c0_30] : memref<8x8xf32, #tpu.memory_space<vmem>>, vector<8x8xf32>
      tpu.vector_store %arg5[%c0_29, %c0_30], %37 {strides = array<i32>} : memref<8x8xf32, #tpu.memory_space<vmem>>, vector<8x8xf32>,
    } else {
    }
    return
  }
  func.func @transform_0(%arg0: i32, %arg1: i32, %arg2: i32) -> (i32, i32) {
    %c0_i32 = arith.constant 0 : i32
    return %arg0, %arg2 : i32, i32
  }
  func.func @transform_1(%arg0: i32, %arg1: i32, %arg2: i32) -> (i32, i32) {
    %c0_i32 = arith.constant 0 : i32
    return %arg1, %arg2 : i32, i32
  }
  func.func @transform_2(%arg0: i32, %arg1: i32, %arg2: i32) -> (i32, i32) {
    %c0_i32 = arith.constant 0 : i32
    return %arg0, %arg1 : i32, i32
  }
}

</mosaic_0001>

<bundles_post_ra>
// kernel: tpu_custom_call.1
= control target key start
LH: loop header
LB: loop body
LE: loop exit
PB: predicated region body
PF: predicated region fallthrough
CT: control target
= control target key end

     0   :  { %7 = vsyncpa [#allocation5], 0  ;;  %s428_s0 = inlined_call_operand.hbm [shape: f32[8,32], index: 0, kind: input, shape index: {}]   ;;  %s429_s1 = inlined_call_operand.hbm [shape: f32[8,32], index: 1, kind: input, shape index: {}]   ;;  %s430_s2 = inlined_call_operand.hbm [shape: f32[8,8], index: 2, kind: output, shape index: {}]  }
   0x1   :  { %8 = vsyncpa [#allocation8], 0 }
   0x2   :  { %9 = vsyncpa [#allocation6], 0  ;;  %s15_s11 = sshll.u32 %s428_s0, 4  ;;  %s383_s12 = smov [#allocation4]   ;;  %s16_s11 = int_to_ptr.hbm [resolvable:$true] %s15_s11 }
   0x3   :  { %s17_s13 = sshll.u32 %s383_s12, 4  ;;  %s26_s16 = sshll.u32 %s429_s1, 4  ;;  %s18_s13 = int_to_ptr.vmem [resolvable:$true] %s17_s13  ;;  %s27_s16 = int_to_ptr.hbm [resolvable:$true] %s26_s16 }
   0x4   :  { %20 = dma.hbm_to_vmem [thread:$0]  %s16_s11, 128, %s18_s13, [#allocation5]  }
   0x5   :  { %s384_s17 = smov [#allocation7]  }
   0x6   :  { %s28_s18 = sshll.u32 %s384_s17, 4  ;;  %s29_s18 = int_to_ptr.vmem [resolvable:$true] %s28_s18 }
   0x7   :  { %31 = dma.hbm_to_vmem [thread:$0]  %s27_s16, 128, %s29_s18, [#allocation8]  }
   0x8   :  { %377 = dma.done.wait [#allocation5], 128  }
   0x9   :  { %378 = vsyncadd [#allocation5], 4294967168 }
   0xa   :  { %379 = dma.done.wait [#allocation8], 128  }
   0xb   :  { %380 = vsyncadd [#allocation8], 4294967168  ;;  %vm56_vm0 = vcmask 261120   ;;  %v385_v0 = vmov 0   ;;  %vm49_vm1 = vcmask 7168   ;;  %v386_v3 = vmov 0.0  }
   0xc   :  { %v90_v1 = vsel %vm56_vm0, 1.0, %v385_v0  ;;  %301 = vset.pattern.permute.xlu0 %v385_v0  ;;  %50 = vst.msk [vmem:[#allocation2] sm:$0xff] %vm49_vm1, %v386_v3  ;;  %v41_v5 = vld [vmem:[#allocation4] sm:$0xff]  ;;  %v42_v6 = vld [vmem:[#allocation7] sm:$0xff]  ;;  %v387_v21 = vmov 1.0   ;;  %vm51_vm2 = vcmask 57344  }
   0xd   :  { %v113_v2 = vsub.f32 %v90_v1, %v90_v1  ;;  %v80_v7 = vmul.f32 %v41_v5, %v41_v5  ;;  %v88_v8 = vmul.f32 %v42_v6, %v42_v6  ;;  %v54_v10 = vpack.c.bf16 %v42_v6, %v42_v6  ;;  %52 = vst.msk [vmem:[#allocation3] sm:$0x1] %vm51_vm2, %v386_v3  ;;  %s388_s0 = smov [#allocation9]   ;;  %s280_s21 = sshll.u32 %s430_s2, 4  ;;  %s281_s21 = int_to_ptr.hbm [resolvable:$true] %s280_s21 }
   0xe   :  { %v53_v17 = vpack.c.bf16 %v41_v5, %v41_v5  ;;  %vm47_vm3 = vcmask 64512   ;;  %s278_s1 = sshll.u32 %s388_s0, 4  ;;  %s279_s1 = int_to_ptr.vmem [resolvable:$true] %s278_s1 }
   0xf   :  { %v114_v4 = vand.u32 4294901760, %v113_v2  ;;  %v81_v11 = vsel %vm56_vm0, %v80_v7, 0.0  ;;  %v93_v12 = vsel %vm56_vm0, %v88_v8, 0  ;;  %v61_v14 = vsel %vm56_vm0, %v54_v10, 0  ;;  %48 = vst.msk [vmem:[#allocation9] sm:$0xff] %vm47_vm3, %v386_v3 }
  0x10   :  { %82 = vadd.xlane.f32.xlu0 %v81_v11  ;;  %v110_v13 = vand.u32 4294901760, %v93_v12  ;;  %70 = vmatpush.bf16.xpose.msra.mxu0 %v61_v14 }
  0x11   :  { %v115_v9 = vsub.f32 %v113_v2, %v114_v4 }
  0x12   :  { %v137_v16 = vsub.f32 %v93_v12, %v110_v13  ;;  %111 = vmatpush.xpose.msra.mxu1 %v110_v13 }
  0x13   :  { %v116_v15 = vand.u32 4294901760, %v115_v9  ;;  %v79_v22 = vld [vmem:[#allocation2] sm:$0xff] }
  0x14   :  { %v138_v18 = vand.u32 4294901760, %v137_v16  ;;  %164 = vmatpush.xpose.msra.mxu3 %v137_v16  ;;  %v87_v36 = vld [vmem:[#allocation3] sm:$0x1] }
  0x15   :  { %117 = vmatmul.f32.vlgmr.msra.gmra.mxu1 %v116_v15 }
  0x16   :  { %187 = vmatpush.xpose.msrb.mxu1 %v110_v13  ;;  %v139_v19 = vsub.f32 %v137_v16, %v138_v18  ;;  %v55_v40 = vld [vmem:[#allocation9] sm:$0xff] }
  0x17   :  { %167 = vmatmul.f32.vlgmr.msra.gmra.mxu3 %v113_v2  ;;  %291 = vmatmul.msk.bf16.vlgmr.msra.gmra.mxu0 %vm56_vm0, %v53_v17 }
  0x18   :  { %235 = vmatpush.xpose.msrb.mxu3 %v110_v13  ;;  %v140_v20 = vand.u32 4294901760, %v139_v19 }
  0x1a   :  { %141 = vmatpush.xpose.msra.mxu2 %v140_v20 }
  0x1d   :  { %292 = vmatmul.msk.f32.vlgmr.msra.gmra.mxu2 %vm56_vm0, %v387_v21  ;;  %191 = vmatmul.f32.vlgmr.msrb.gmra.mxu1 %v114_v4 }
  0x1e   :  { %213 = vmatpush.xpose.msrb.mxu2 %v138_v18 }
  0x1f   :  { %294 = vmatmul.msk.f32.vlgmr.msrb.gmra.mxu3 %vm56_vm0, %v387_v21 }
  0x25   :  { %293 = vmatmul.msk.f32.vlgmr.msrb.gmra.mxu2 %vm56_vm0, %v387_v21 }
  0x83   :  { %v83_v23 = vpop.xlane.xlu0 %82 }
  0x84   :  { %v84_v24 = vadd.f32 %v83_v23, %v79_v22 }
  0x86   :  { %86 = vst.msk [vmem:[#allocation2] sm:$0xff] %vm49_vm1, %v84_v24 }
  0x8d   :  { %v247_v25 = vld [vmem:[#allocation2] sm:$0xff] }
  0x8e   :  { %251 = vperm.xlu0 %301, %v247_v25  }
  0x92   :  { %v118_v26 = vpop.f32.mrf.mxu1 }
  0x94   :  { %v72_v39 = vpop.f32.mrf.mxu0 }
  0x95   :  { %v76_v42 = vadd.f32 %v72_v39, %v55_v40 }
  0x97   :  { %78 = vst.msk [vmem:[#allocation9] sm:$0xff] %vm47_vm3, %v76_v42 }
  0x9a   :  { %v168_v27 = vpop.f32.mrf.mxu3  ;;  %v192_v30 = vpop.f32.mrf.mxu1 }
  0x9c   :  { %v74_v41 = vpop.f32.mrf.mxu0 }
  0x9e   :  { %v269_v53 = vld [vmem:[#allocation9] sm:$0xff] }
  0xa0   :  { %v144_v28 = vpop.f32.mrf.mxu2 }
  0xa1   :  { %v145_v29 = vadd.f32 %v144_v28, %v118_v26 }
  0xa2   :  { %v238_v34 = vpop.f32.mrf.mxu3 }
  0xa3   :  { %v169_v31 = vadd.f32 %v168_v27, %v145_v29 }
  0xa5   :  { %v193_v32 = vadd.f32 %v192_v30, %v169_v31 }
  0xa8   :  { %v216_v33 = vpop.f32.mrf.mxu2 }
  0xa9   :  { %v217_v35 = vadd.f32 %v216_v33, %v193_v32 }
  0xab   :  { %v239_v37 = vadd.f32 %v238_v34, %v217_v35 }
  0xad   :  { %v241_v38 = vadd.f32 %v239_v37, %v87_v36 }
  0xaf   :  { %243 = vst.msk [vmem:[#allocation3] sm:$0x1] %vm51_vm2, %v241_v38 }
  0xb6   :  { %v302_v43 = vld [vmem:[#allocation3] ss:$0 sm:$0xff] }
 0x100   :  { %v252_v44 = vpop.permute.xlu0 %251 }
 0x101   :  { %v257_v45 = vmul.f32 %v302_v43, %v252_v44 }
 0x103   :  { %v258_v46 = vmax.f32 %v257_v45, 1e-16 }
 0x105   :  { %303 = vrsqrt.f32 %v258_v46  ;;  %vm265_vm5 = vweird.f32 %v258_v46 }
 0x10b   :  { %v304_v47 = vpop.eup %303 }
 0x10c   :  { %v260_v48 = vmul.f32 %v304_v47, %v258_v46  ;;  %vm266_vm4 = vweird.f32 %v304_v47 }
 0x10d   :  { %vm267_vm6 = vmor %vm265_vm5, %vm266_vm4 }
 0x10e   :  { %v261_v49 = vmul.f32 %v304_v47, %v260_v48 }
 0x110   :  { %v262_v50 = vmul.f32 0.5, %v261_v49 }
 0x112   :  { %v263_v51 = vsub.f32 1.5, %v262_v50 }
 0x114   :  { %v264_v52 = vmul.f32 %v304_v47, %v263_v51 }
 0x116   :  { %v268_v54 = vsel %vm267_vm6, %v304_v47, %v264_v52 }
 0x117   :  { %v270_v55 = vmul.f32 %v269_v53, %v268_v54 }
 0x119   :  { %v271_v56 = vmul.f32 20.0, %v270_v55 }
 0x11b   :  { %272 = vst.msk [vmem:[#allocation9] sm:$0xff] %vm47_vm3, %v271_v56 }
 0x11c   :  { %283 = dma.vmem_to_hbm [thread:$0]  %s279_s1, 128, %s281_s21, [#allocation6]  }
 0x11d   :  { %381 = dma.done.wait [#allocation6], 128  }
 0x11e   :  { %382 = vsyncadd [#allocation6], 4294967168 }
 0x11f   :  { %288 = vsyncpa [#allocation5], 1 }
 0x120   :  { %289 = vsyncpa [#allocation8], 1 }
 0x121   :  { %290 = vsyncpa [#allocation6], 1 }

</bundles_post_ra>
